<compile_context>
chip_gen: v7x
topology: tpu7x:2x2x1
jax: 0.10.0
libtpu: 0.0.40
codegen_flags: <defaults>
</compile_context>

<pallas_src>
import jax
import jax.numpy as jnp
from jax.experimental import pallas as pl
from jax.experimental.pallas import tpu as pltpu


def _vmem_budgets():
    """Return (pipeline-block budget, vmem_limit_bytes), hardware-aware."""
    cap = None
    try:
        info = pltpu.get_tpu_info()
        cap = getattr(info, "vmem_capacity_bytes", None)
    except Exception:
        cap = None
    if cap is None:
        cap = 64 * 1024 * 1024          # assume the smallest VMEM (v7x) if unknown
    if cap <= 64 * 1024 * 1024:
        # v7x: 64 MiB physical per TensorCore -> leave headroom for Mosaic scratch.
        return 40 * 1024 * 1024, 48 * 1024 * 1024
    # v5e / v6e: 128 MiB physical VMEM -> bigger blocks, fewer grid steps.
    return 48 * 1024 * 1024, 64 * 1024 * 1024


def _pick_b_blk(B, per_batch_bytes, block_budget):
    """Pick the batch block so 2x(in) + 2x(out) pipeline buffers fit the budget,
    targeting ~4-8 grid steps with each block >= ~1 MiB."""
    max_blk = block_budget // (4 * per_batch_bytes)
    if max_blk < 1:
        # TODO(synk): tile the spatial axis (two-pass pooling) for per-batch
        # blocks that do not even fit un-double-buffered in VMEM.
        return 1
    min_blk = max(1, ((1 << 20) + per_batch_bytes - 1) // per_batch_bytes)  # >= ~1 MiB
    blk = (B + 7) // 8                  # aim for ~8 grid steps
    blk = max(blk, min_blk)             # ...but keep blocks big enough
    blk = min(blk, max_blk, B)          # ...and inside the VMEM budget / array
    return max(blk, 1)


def _sca_kernel(x_ref, w1t_ref, b1_ref, w2t_ref, b2_ref, o_ref):
    x = x_ref[...]                                    # (B_blk, C, HW), input dtype

    # Pooling: accumulate the sum in f32 (no full-block f32 temporary);
    # max in the input dtype is exact, then widened for the FC math.
    s = jnp.sum(x, axis=-1, dtype=jnp.float32)        # (B_blk, C)
    m = jnp.max(x, axis=-1).astype(jnp.float32)       # (B_blk, C)

    inv_hw = 1.0 / float(x_ref.shape[-1])
    # fc1 is linear: fc1(avg) + fc1(max) == W1 @ (avg + max) + 2*b1
    pooled = s * inv_hw + m                           # (B_blk, C)

    w1t = w1t_ref[...].astype(jnp.float32)            # (C, C_r)
    b1 = b1_ref[...].astype(jnp.float32)              # (1, C_r)
    w2t = w2t_ref[...].astype(jnp.float32)            # (C_r, C)
    b2 = b2_ref[...].astype(jnp.float32)              # (1, C)

    h = jnp.dot(pooled, w1t, preferred_element_type=jnp.float32) + 2.0 * b1
    h = jnp.maximum(h, 0.0)                           # ReLU, (B_blk, C_r)
    att = jnp.dot(h, w2t, preferred_element_type=jnp.float32) + b2
    att = jax.nn.sigmoid(att)                         # (B_blk, C)

    # The op carrying all the bytes stays in the input dtype.
    o_ref[...] = x * att[:, :, None].astype(x.dtype)


def simple_channel_attention(x, w1, b1, w2, b2):
    """x: (B, C, H, W) NCHW.  w1: (C_r, C), b1: (C_r,), w2: (C, C_r), b2: (C,)."""
    B, C, H, W = x.shape
    HW = H * W
    C_r = w1.shape[0]

    # No wrapper-side padding: the block's last two dims equal the full array
    # extents (C, HW), which is always legal; Mosaic masks the (at most one)
    # partial lane chunk itself, keeping exactly 1 HBM read + 1 write of x.
    # TODO(synk): for HW << 128 an NHWC (C-on-lanes) layout would be denser,
    # but only if the caller already provides NHWC without an extra transpose.
    x_flat = x.reshape(B, C, HW)

    # Pre-transpose weights so in-kernel matmuls are (B_blk,C)@(C,C_r) etc.
    w1_t = w1.T                      # (C, C_r)
    w2_t = w2.T                      # (C_r, C)
    b1_2d = b1.reshape(1, C_r)
    b2_2d = b2.reshape(1, C)

    block_budget, vmem_limit = _vmem_budgets()
    per_batch_bytes = C * HW * x.dtype.itemsize
    b_blk = _pick_b_blk(B, per_batch_bytes, block_budget)
    grid = (pl.cdiv(B, b_blk),)      # partial tail block is fine

    out_flat = pl.pallas_call(
        _sca_kernel,
        out_shape=jax.ShapeDtypeStruct((B, C, HW), x.dtype),
        grid_spec=pltpu.PrefetchScalarGridSpec(
            num_scalar_prefetch=0,
            grid=grid,
            in_specs=[
                pl.BlockSpec((b_blk, C, HW), lambda b: (b, 0, 0)),
                pl.BlockSpec((C, C_r), lambda b: (0, 0)),
                pl.BlockSpec((1, C_r), lambda b: (0, 0)),
                pl.BlockSpec((C_r, C), lambda b: (0, 0)),
                pl.BlockSpec((1, C), lambda b: (0, 0)),
            ],
            out_specs=pl.BlockSpec((b_blk, C, HW), lambda b: (b, 0, 0)),
        ),
        compiler_params=pltpu.CompilerParams(
            dimension_semantics=("parallel",),
            vmem_limit_bytes=vmem_limit,
        ),
    )(x_flat, w1_t, b1_2d, w2_t, b2_2d)

    return out_flat.reshape(B, C, H, W)


def reference(x, w1, b1, w2, b2):
    """Pure-JAX reference of the PyTorch forward (fc1 applied twice, bias twice)."""
    avg = jnp.mean(x, axis=(2, 3), keepdims=True)            # (B, C, 1, 1)
    mx = jnp.max(x, axis=(2, 3), keepdims=True)              # (B, C, 1, 1)

    def fc(v, w, b):                                          # 1x1 conv == linear over C
        return jnp.einsum('bcij,oc->boij', v, w) + b[None, :, None, None]

    att = fc(avg, w1, b1) + fc(mx, w1, b1)
    att = jax.nn.relu(att)
    att = jax.nn.sigmoid(fc(att, w2, b2))
    return x * att


if __name__ == "__main__":
    key = jax.random.PRNGKey(0)
    kx, k1, kb1, k2, kb2 = jax.random.split(key, 5)

    # Shapes consistent with the module (channels >= reduction).
    B, C, H, W = 2, 16, 16, 16
    reduction = 8
    C_r = C // reduction

    x = jax.random.normal(kx, (B, C, H, W), dtype=jnp.float32)
    w1 = jax.random.normal(k1, (C_r, C), dtype=jnp.float32) * 0.1
    b1 = jax.random.normal(kb1, (C_r,), dtype=jnp.float32) * 0.1
    w2 = jax.random.normal(k2, (C, C_r), dtype=jnp.float32) * 0.1
    b2 = jax.random.normal(kb2, (C,), dtype=jnp.float32) * 0.1

    # Case 1: f32, HW a multiple of 128 lanes (16*16 = 256).
    out = jax.block_until_ready(simple_channel_attention(x, w1, b1, w2, b2))
    ref = reference(x, w1, b1, w2, b2)
    assert out.shape == (B, C, H, W)
    assert jnp.allclose(out, ref, atol=1e-5, rtol=1e-5), "f32 aligned mismatch"

    # Case 2: f32, non-128-multiple spatial (7*9 = 63) -> exercises masked tail.
    x2 = jax.random.normal(kx, (3, C, 7, 9), dtype=jnp.float32)
    out2 = jax.block_until_ready(simple_channel_attention(x2, w1, b1, w2, b2))
    ref2 = reference(x2, w1, b1, w2, b2)
    assert jnp.allclose(out2, ref2, atol=1e-5, rtol=1e-5), "f32 masked mismatch"

    # Case 3: bf16 input (looser tolerance; pooling sum still accumulates in f32).
    xb = x.astype(jnp.bfloat16)
    outb = jax.block_until_ready(
        simple_channel_attention(xb, w1, b1, w2, b2)).astype(jnp.float32)
    refb = reference(xb.astype(jnp.float32), w1, b1, w2, b2)
    assert jnp.allclose(outb, refb, atol=5e-2, rtol=5e-2), "bf16 mismatch"

    print("KERNEL_OK")
</pallas_src>

<mosaic_0001>
module attributes {stable_mosaic.version = 11 : i64} {
  func.func @_sca_kernel(%arg0: i32, %arg1: memref<2x16x256xf32, #tpu.memory_space<vmem>>, %arg2: memref<16x2xf32, #tpu.memory_space<vmem>>, %arg3: memref<1x2xf32, #tpu.memory_space<vmem>>, %arg4: memref<2x16xf32, #tpu.memory_space<vmem>>, %arg5: memref<1x16xf32, #tpu.memory_space<vmem>>, %arg6: memref<2x16x256xf32, #tpu.memory_space<vmem>>) attributes {dimension_semantics = [#tpu.dimension_semantics<parallel>], iteration_bounds = array<i64: 1>, scalar_prefetch = 0 : i64, scratch_operands = 0 : i64, tpu.core_type = #tpu.core_type<tc>, window_params = [{transform_indices = @transform_0, window_bounds = array<i64: 2, 16, 256>}, {pipeline_mode = #tpu.pipeline_mode<synchronous>, transform_indices = @transform_1, window_bounds = array<i64: 16, 2>}, {pipeline_mode = #tpu.pipeline_mode<synchronous>, transform_indices = @transform_2, window_bounds = array<i64: 1, 2>}, {pipeline_mode = #tpu.pipeline_mode<synchronous>, transform_indices = @transform_3, window_bounds = array<i64: 2, 16>}, {pipeline_mode = #tpu.pipeline_mode<synchronous>, transform_indices = @transform_4, window_bounds = array<i64: 1, 16>}, {transform_indices = @transform_5, window_bounds = array<i64: 2, 16, 256>}]} {
    %c0 = arith.constant 0 : index
    %c0_0 = arith.constant 0 : index
    %c0_1 = arith.constant 0 : index
    %0 = vector.load %arg1[%c0, %c0_0, %c0_1] : memref<2x16x256xf32, #tpu.memory_space<vmem>>, vector<2x16x256xf32>
    %cst = arith.constant dense<0.000000e+00> : vector<2x16xf32>
    %1 = vector.multi_reduction <add>, %0, %cst [2] : vector<2x16x256xf32> to vector<2x16xf32>
    %cst_2 = arith.constant dense<0xFF800000> : vector<2x16xf32>
    %2 = vector.multi_reduction <maximumf>, %0, %cst_2 [2] : vector<2x16x256xf32> to vector<2x16xf32>
    %cst_3 = arith.constant 3.906250e-03 : f32
    %3 = vector.broadcast %cst_3 : f32 to vector<2x16xf32>
    %4 = arith.mulf %1, %3 : vector<2x16xf32>
    %5 = arith.addf %4, %2 : vector<2x16xf32>
    %c0_4 = arith.constant 0 : index
    %c0_5 = arith.constant 0 : index
    %6 = vector.load %arg2[%c0_4, %c0_5] : memref<16x2xf32, #tpu.memory_space<vmem>>, vector<16x2xf32>
    %c0_6 = arith.constant 0 : index
    %c0_7 = arith.constant 0 : index
    %7 = vector.load %arg3[%c0_6, %c0_7] : memref<1x2xf32, #tpu.memory_space<vmem>>, vector<1x2xf32>
    %c0_8 = arith.constant 0 : index
    %c0_9 = arith.constant 0 : index
    %8 = vector.load %arg4[%c0_8, %c0_9] : memref<2x16xf32, #tpu.memory_space<vmem>>, vector<2x16xf32>
    %c0_10 = arith.constant 0 : index
    %c0_11 = arith.constant 0 : index
    %9 = vector.load %arg5[%c0_10, %c0_11] : memref<1x16xf32, #tpu.memory_space<vmem>>, vector<1x16xf32>
    %cst_12 = arith.constant dense<0.000000e+00> : vector<2x2xf32>
    %10 = tpu.matmul %5, %6, %cst_12 {dimension_numbers = #tpu.dot_dimension_numbers<[1], [0], [0], [1], [0, 0, 1, 1], [], []>} : vector<2x16xf32>, vector<16x2xf32>, vector<2x2xf32> -> vector<2x2xf32>
    %cst_13 = arith.constant 2.000000e+00 : f32
    %11 = vector.broadcast %cst_13 : f32 to vector<1x2xf32>
    %12 = arith.mulf %11, %7 : vector<1x2xf32>
    %13 = vector.broadcast %12 : vector<1x2xf32> to vector<2x2xf32>
    %14 = arith.addf %10, %13 : vector<2x2xf32>
    %cst_14 = arith.constant 0.000000e+00 : f32
    %15 = vector.broadcast %cst_14 : f32 to vector<2x2xf32>
    %16 = arith.maximumf %14, %15 : vector<2x2xf32>
    %cst_15 = arith.constant dense<0.000000e+00> : vector<2x16xf32>
    %17 = tpu.matmul %16, %8, %cst_15 {dimension_numbers = #tpu.dot_dimension_numbers<[1], [0], [0], [1], [0, 0, 1, 1], [], []>} : vector<2x2xf32>, vector<2x16xf32>, vector<2x16xf32> -> vector<2x16xf32>
    %18 = vector.broadcast %9 : vector<1x16xf32> to vector<2x16xf32>
    %19 = arith.addf %17, %18 : vector<2x16xf32>
    %20 = arith.negf %19 : vector<2x16xf32>
    %21 = math.exp %20 : vector<2x16xf32>
    %cst_16 = arith.constant 1.000000e+00 : f32
    %22 = vector.broadcast %cst_16 : f32 to vector<2x16xf32>
    %23 = arith.addf %22, %21 : vector<2x16xf32>
    %24 = arith.divf %22, %23 : vector<2x16xf32>
    %25 = vector.shape_cast %24 : vector<2x16xf32> to vector<2x16x1xf32>
    %26 = vector.broadcast %25 : vector<2x16x1xf32> to vector<2x16x256xf32>
    %27 = arith.mulf %0, %26 : vector<2x16x256xf32>
    %c0_17 = arith.constant 0 : index
    %c0_18 = arith.constant 0 : index
    %c0_19 = arith.constant 0 : index
    %28 = vector.load %arg6[%c0_17, %c0_18, %c0_19] : memref<2x16x256xf32, #tpu.memory_space<vmem>>, vector<2x16x256xf32>
    tpu.vector_store %arg6[%c0_17, %c0_18, %c0_19], %27 {strides = array<i32>} : memref<2x16x256xf32, #tpu.memory_space<vmem>>, vector<2x16x256xf32>,
    return
  }
  func.func @transform_0(%arg0: i32) -> (i32, i32, i32) {
    %c0_i32 = arith.constant 0 : i32
    %c0_i32_0 = arith.constant 0 : i32
    %c0_i32_1 = arith.constant 0 : i32
    return %arg0, %c0_i32, %c0_i32_0 : i32, i32, i32
  }
  func.func @transform_1(%arg0: i32) -> (i32, i32) {
    %c0_i32 = arith.constant 0 : i32
    %c0_i32_0 = arith.constant 0 : i32
    %c0_i32_1 = arith.constant 0 : i32
    return %c0_i32, %c0_i32_0 : i32, i32
  }
  func.func @transform_2(%arg0: i32) -> (i32, i32) {
    %c0_i32 = arith.constant 0 : i32
    %c0_i32_0 = arith.constant 0 : i32
    %c0_i32_1 = arith.constant 0 : i32
    return %c0_i32, %c0_i32_0 : i32, i32
  }
  func.func @transform_3(%arg0: i32) -> (i32, i32) {
    %c0_i32 = arith.constant 0 : i32
    %c0_i32_0 = arith.constant 0 : i32
    %c0_i32_1 = arith.constant 0 : i32
    return %c0_i32, %c0_i32_0 : i32, i32
  }
  func.func @transform_4(%arg0: i32) -> (i32, i32) {
    %c0_i32 = arith.constant 0 : i32
    %c0_i32_0 = arith.constant 0 : i32
    %c0_i32_1 = arith.constant 0 : i32
    return %c0_i32, %c0_i32_0 : i32, i32
  }
  func.func @transform_5(%arg0: i32) -> (i32, i32, i32) {
    %c0_i32 = arith.constant 0 : i32
    %c0_i32_0 = arith.constant 0 : i32
    %c0_i32_1 = arith.constant 0 : i32
    return %arg0, %c0_i32, %c0_i32_0 : i32, i32, i32
  }
}

</mosaic_0001>

<bundles_post_ra>
// kernel: tpu_custom_call.1
= control target key start
LH: loop header
LB: loop body
LE: loop exit
PB: predicated region body
PF: predicated region fallthrough
CT: control target
= control target key end

     0   :  { %10 = vsyncpa [#allocation3], 0  ;;  %s540_s0 = inlined_call_operand.hbm [shape: f32[2,16,256], index: 0, kind: input, shape index: {}]   ;;  %s541_s1 = inlined_call_operand.vmem [shape: f32[16,2], index: 1, kind: input, shape index: {}]   ;;  %s542_s2 = inlined_call_operand.vmem [shape: f32[1,2], index: 2, kind: input, shape index: {}]   ;;  %s543_s3 = inlined_call_operand.vmem [shape: f32[2,16], index: 3, kind: input, shape index: {}]   ;;  %s544_s4 = inlined_call_operand.vmem [shape: f32[1,16], index: 4, kind: input, shape index: {}]   ;;  %s545_s5 = inlined_call_operand.hbm [shape: f32[2,16,256], index: 5, kind: output, shape index: {}]  }
   0x1   :  { %11 = vsyncpa [#allocation4], 0  ;;  %s418_s18 = smov [#allocation2]   ;;  %s370_s22 = scalar_lea.hbm %s540_s0, 1024 }
   0x2   :  { %s17_s19 = sshll.u32 %s418_s18, 4  ;;  %p371_p0 = scmp.ne.s32.totalorder %s540_s0, %s370_s22  ;;  %s18_s19 = int_to_ptr.vmem [resolvable:$true] %s17_s19 }
   0x3   :  { %p374_p1 = scmp.lt.u32.totalorder %s370_s22, %s540_s0 }
   0x5   :  { %p376_p2 = pnand %p374_p1, %p371_p0 }
   0x7   :  { %379 = shalt.err (!%p376_p2)
}
   0x8   :  { %s380_s27 = scalar_lea.vmem %s18_s19, 1024  ;;  %p385_p4 = scmp.lt.s32.totalorder %s18_s19, %s18_s19 }
   0x9   :  { %p381_p3 = scmp.ne.s32.totalorder %s18_s19, %s380_s27  ;;  %p386_p5 = scmp.lt.s32.totalorder %s380_s27, %s380_s27 }
   0xb   :  { %p387_p6 = por %p386_p5, %p385_p4 }
   0xd   :  { %p388_p7 = pnand %p387_p6, %p381_p3 }
   0xf   :  { %391 = shalt.err (!%p388_p7)
}
  0x10   :  { %s419_s28 = smov 256   ;;  %s420_s29 = smov 16  }
  0x11   :  { %23 = dma.hbm_to_vmem [thread:$0]  %s540_s0, 1024, %s18_s19, [#allocation3], %s419_s28, %s419_s28, %s420_s29  }
  0x12   :  { %414 = dma.done.wait [#allocation3], 1024  }
  0x13   :  { %415 = vsyncadd [#allocation3], 4294966272  ;;  %v470_v0 = vld [vmem:[#allocation2 + $0x20] sm:$0xff]  ;;  %v472_v1 = vld [vmem:[#allocation2 + $0x28] sm:$0xff]  ;;  %v421_v19 = vmov 0.0|0.0   ;;  %vm422_vm0 = vmmov 0   ;;  %v82_v21 = vlaneseq }
  0x14   :  { %v474_v2 = vld [vmem:[#allocation2] sm:$0xff]  ;;  %v49_v3 = vadd.f32 %v472_v1, %v470_v0  ;;  %v478_v4 = vld [vmem:[#allocation2 + $0x8] sm:$0xff]  ;;  %v480_v5 = vld [vmem:[#allocation2 + $0x30] sm:$0xff]  ;;  %v61_v15 = vmax.f32 %v470_v0, %v472_v1  ;;  %356 = vmatprep.subr.bf16.mxu0 %v421_v19  ;;  %v423_v20 = vmov 0.0   ;;  %vm102_vm1 = vcmask 130112  }
  0x15   :  { %v482_v6 = vld [vmem:[#allocation2 + $0x38] sm:$0xff]  ;;  %v43_v7 = vadd.f32 %v478_v4, %v474_v2  ;;  %v486_v8 = vld [vmem:[#allocation2 + $0x10] sm:$0xff]  ;;  %v55_v13 = vmax.f32 %v474_v2, %v478_v4  ;;  %v75_v16 = vld [vmem:[%s541_s1] sm:$0xff]  ;;  %348 = vmatprep.mubr.msk.f32.mxu0 %vm422_vm0, %v423_v20  ;;  %351 = vmatprep.subr.mxu1 %v423_v20  ;;  %v92_v24 = vand.u32 127, %v82_v21  ;;  %v83_v27 = vshrl.u32 %v82_v21, 7 }
  0x16   :  { %v488_v9 = vld [vmem:[#allocation2 + $0x18] sm:$0xff]  ;;  %50 = vadd.xlane.f32.xlu1 %v49_v3  ;;  %v52_v10 = vadd.f32 %v482_v6, %v480_v5  ;;  %v64_v14 = vmax.f32 %v480_v5, %v482_v6  ;;  %v76_v17 = vld [vmem:[%s541_s1 + $0x8] sm:$0xff]  ;;  %353 = vmatprep.mubr.msk.f32.mxu1 %vm422_vm0, %v423_v20  ;;  %vm113_vm2 = vcmask 1041409   ;;  %vm115_vm3 = vcmask 130048   ;;  %v78_v50 = vld [vmem:[%s543_s3] sm:$0x3] }
  0x17   :  { %44 = vadd.xlane.f32.xlu0 %v43_v7  ;;  %v46_v11 = vadd.f32 %v488_v9, %v486_v8  ;;  %v58_v12 = vmax.f32 %v486_v8, %v488_v9  ;;  %v357_v18 = vpack.c.bf16 %v76_v17, %v75_v16  ;;  %v97_v28 = vadd.s32 4294967288, %v92_v24  ;;  %v77_v51 = vld [vmem:[%s542_s2] sm:$0x1]  ;;  %s424_s2 = smov [#allocation5]  }
  0x18   :  { %v95_v35 = vsub.s32 %v92_v24, %v83_v27  ;;  %vm199_vm4 = vcmask 1041408   ;;  %v80_v52 = vmul.f32 2.0, %v77_v51  ;;  %v84_v53 = vsub.s32 0, %v83_v27  ;;  %v335_v59 = vld [vmem:[%s544_s4] ss:$0 sm:$0xff]  ;;  %s322_s3 = sshll.u32 %s424_s2, 4  ;;  %s323_s3 = int_to_ptr.vmem [resolvable:$true] %s322_s3 }
  0x19   :  { %358 = vmatpush3.bf16.msra.mxu0 %v357_v18  ;;  %v100_v33 = vsub.s32 %v97_v28, %v83_v27  ;;  %352 = vmatpush3.msk.msra.mxu1 %vm199_vm4, %v78_v50  ;;  %vm195_vm5 = vcmask 15360   ;;  %s392_s4 = scalar_lea.vmem %s323_s3, 1024  ;;  %p397_p9 = scmp.lt.s32.totalorder %s323_s3, %s323_s3 }
  0x1a   :  { %53 = vadd.xlane.f32.xlu1 %v52_v10  ;;  %v85_v54 = vrot.slane %v80_v52, %v84_v53  ;;  %p393_p8 = scmp.ne.s32.totalorder %s323_s3, %s392_s4  ;;  %p398_p10 = scmp.lt.s32.totalorder %s392_s4, %s392_s4 }
  0x1b   :  { %47 = vadd.xlane.f32.xlu0 %v46_v11 }
  0x1c   :  { %p399_p11 = por %p398_p10, %p397_p9 }
  0x1e   :  { %59 = vmax.xlane.f32.xlu1 %v58_v12  ;;  %v292_v12 = vsub.s32 1, %v83_v27  ;;  %p400_p12 = pnand %p399_p11, %p393_p8 }
  0x1f   :  { %56 = vmax.xlane.f32.xlu0 %v55_v13 }
  0x22   :  { %65 = vmax.xlane.f32.xlu1 %v64_v14 }
  0x23   :  { %62 = vmax.xlane.f32.xlu0 %v61_v15 }
  0xa3   :  { %v51_v22 = vpop.xlane.xlu1 %50 }
  0xa4   :  { %v45_v23 = vpop.xlane.xlu0 %44  ;;  %v69_v38 = vmul.f32 0.00390625, %v51_v22 }
  0xa5   :  { %v67_v29 = vmul.f32 0.00390625, %v45_v23 }
  0xa7   :  { %v54_v25 = vpop.xlane.xlu1 %53 }
  0xa8   :  { %v48_v26 = vpop.xlane.xlu0 %47  ;;  %v70_v37 = vmul.f32 0.00390625, %v54_v25 }
  0xa9   :  { %v68_v30 = vmul.f32 0.00390625, %v48_v26 }
  0xab   :  { %v60_v31 = vpop.xlane.xlu1 %59 }
  0xac   :  { %v57_v32 = vpop.xlane.xlu0 %56  ;;  %v72_v34 = vadd.f32 %v68_v30, %v60_v31 }
  0xad   :  { %v71_v36 = vadd.f32 %v67_v29, %v57_v32 }
  0xae   :  { %v101_v42 = vrot.slane %v72_v34, %v100_v33 }
  0xaf   :  { %v66_v39 = vpop.xlane.xlu1 %65  ;;  %v96_v43 = vrot.slane %v71_v36, %v95_v35 }
  0xb0   :  { %v74_v40 = vadd.f32 %v70_v37, %v66_v39  ;;  %v63_v41 = vpop.xlane.xlu0 %62 }
  0xb1   :  { %v73_v44 = vadd.f32 %v69_v38, %v63_v41  ;;  %v103_v47 = vsel %vm102_vm1, %v101_v42, %v96_v43 }
  0xb2   :  { %v111_v45 = vrot.slane %v74_v40, %v100_v33 }
  0xb3   :  { %v107_v46 = vrot.slane %v73_v44, %v95_v35 }
  0xb5   :  { %v112_v48 = vsel %vm102_vm1, %v111_v45, %v107_v46 }
  0xb6   :  { %v114_v49 = vsel %vm113_vm2, %v112_v48, %v103_v47 }
  0xb7   :  { %349 = vmatmul.mubr.msk.f32.vlgmr.msra.gmra.mrb[0].mxu0 %vm115_vm3, %v114_v49 }
 0x18a   :  { %v184_v55 = vpop.f32.mrb[0].mxu0 }
 0x18b   :  { %v185_v56 = vadd.f32 %v184_v55, %v85_v54  ;;  %v350_v57 = vpop.f32.mrb[1].mxu0 }
 0x18d   :  { %v188_v58 = vmax.f32 %v185_v56, 0.0 }
 0x18f   :  { %354 = vmatmul.mubr.msk.f32.vlgmr.msra.gmra.mrb[0].mxu1 %vm195_vm5, %v188_v58 }
 0x262   :  { %v269_v60 = vpop.f32.mrb[0].mxu1 }
 0x263   :  { %v270_v61 = vadd.f32 %v335_v59, %v269_v60  ;;  %v355_v62 = vpop.f32.mrb[1].mxu1 }
 0x265   :  { %v338_v63 = vmul.f32 -1.442695, %v270_v61 }
 0x267   :  { %366 = vpow2.f32 %v338_v63 }
 0x271   :  { %v367_v3 = vpop.eup %366 }
 0x272   :  { %v276_v7 = vadd.f32 1.0, %v367_v3 }
 0x274   :  { %368 = vrcp.f32 %v276_v7 }
 0x27e   :  { %v369_v10 = vpop.eup %368 }
 0x27f   :  { %v282_v11 = vrot.slane %v369_v10, %v84_v53  ;;  %v293_v13 = vrot.slane %v369_v10, %v292_v12 }
 0x281   :  { %288 = vbcast.lane.b32.xlu1 %v282_v11, 264  ;;  %284 = vbcast.lane.b32.xlu0 %v282_v11, 256 }
 0x285   :  { %295 = vbcast.lane.b32.xlu1 %v293_v13, 256 }
 0x289   :  { %299 = vbcast.lane.b32.xlu1 %v293_v13, 264 }
 0x2f3   :  { %v289_v14 = vpop.permute.xlu1 %288  ;;  %v285_v15 = vpop.permute.xlu0 %284 }
 0x2f4   :  { %v303_v16 = vmul.f32 %v289_v14, %v486_v8  ;;  %v304_v17 = vmul.f32 %v289_v14, %v488_v9  ;;  %v301_v18 = vmul.f32 %v285_v15, %v474_v2  ;;  %v302_v19 = vmul.f32 %v285_v15, %v478_v4 }
 0x2f6   :  { %311 = vst [vmem:[#allocation5 + $0x10] sm:$0xff] %v303_v16  ;;  %312 = vst [vmem:[#allocation5 + $0x18] sm:$0xff] %v304_v17 }
 0x2f7   :  { %309 = vst [vmem:[#allocation5] sm:$0xff] %v301_v18  ;;  %310 = vst [vmem:[#allocation5 + $0x8] sm:$0xff] %v302_v19  ;;  %v296_v20 = vpop.permute.xlu1 %295 }
 0x2f8   :  { %v305_v21 = vmul.f32 %v296_v20, %v470_v0  ;;  %v306_v22 = vmul.f32 %v296_v20, %v472_v1 }
 0x2fa   :  { %313 = vst [vmem:[#allocation5 + $0x20] sm:$0xff] %v305_v21  ;;  %314 = vst [vmem:[#allocation5 + $0x28] sm:$0xff] %v306_v22 }
 0x2fb   :  { %v300_v8 = vpop.permute.xlu1 %299 }
 0x2fc   :  { %v307_v9 = vmul.f32 %v300_v8, %v480_v5  ;;  %v308_v2 = vmul.f32 %v300_v8, %v482_v6 }
 0x2fe   :  { %315 = vst [vmem:[#allocation5 + $0x30] sm:$0xff] %v307_v9  ;;  %316 = vst [vmem:[#allocation5 + $0x38] sm:$0xff] %v308_v2 }
 0x2ff   :  { %403 = shalt.err (!%p400_p12)
}
 0x300   :  { %s404_s17 = scalar_lea.hbm %s545_s5, 1024 }
 0x301   :  { %p405_p13 = scmp.ne.s32.totalorder %s545_s5, %s404_s17  ;;  %p408_p0 = scmp.lt.u32.totalorder %s404_s17, %s545_s5 }
 0x303   :  { %p410_p1 = pnand %p408_p0, %p405_p13 }
 0x305   :  { %413 = shalt.err (!%p410_p1)
}
 0x306   :  { %328 = dma.vmem_to_hbm [thread:$0]  %s323_s3, 1024, %s545_s5, [#allocation4], %s419_s28, %s419_s28, %s420_s29  }
 0x307   :  { %416 = dma.done.wait [#allocation4], 1024  }
 0x308   :  { %417 = vsyncadd [#allocation4], 4294966272 }
 0x309   :  { %332 = vsyncpa [#allocation3], 1 }
 0x30a   :  { %333 = vsyncpa [#allocation4], 1 }

</bundles_post_ra>
